<compile_context>
chip_gen: v5e
topology: v5e:2x2
jax: 0.10.0
libtpu: 0.0.40
codegen_flags: <defaults>
</compile_context>

<pallas_src>
import jax
import jax.numpy as jnp
from jax.experimental import pallas as pl
from jax.experimental.pallas import tpu as pltpu


def _make_fwd_kernel(activation):
    """Builds the fused forward kernel; `activation` is traced elementwise."""

    def kernel(consts_ref, state_ref, b2_ref,        # SMEM scalar inputs
               x_ref, w1_ref, b1_ref, w2_ref,        # VMEM tensor inputs
               out_ref, state_out_ref,               # outputs
               acc_ref):                             # VMEM scratch
        # consts_ref    : (3,)   SMEM f32  [N_batch, max_points, 1/N_batch]
        # state_ref     : (4,)   SMEM f32  [ra1, pc1, ra2, pc2] (current buffers)
        # b2_ref        : (2,)   SMEM f32  linear2 bias
        # x_ref         : (TB,2) VMEM      batch tile of the input
        # w1_ref        : (2,M)  VMEM      linear1 weight, (in_features, middle)
        # b1_ref        : (1,M)  VMEM      linear1 bias
        # w2_ref        : (2,M)  VMEM      linear2 weight, (out_features, in_features)
        # out_ref       : (TB,2) VMEM      amplified model output tile
        # state_out_ref : (1,4)  VMEM f32  [A_final1, M_final1, A_final2, M_final2]
        # acc_ref       : (1,2)  VMEM f32  running sums of per-row L2 norms (eater1, eater2)
        i = pl.program_id(0)

        @pl.when(i == 0)
        def _init():
            acc_ref[...] = jnp.zeros_like(acc_ref)

        # Gains use the *current* (pre-update) running averages, exactly like the
        # PyTorch forward (the buffer update happens under no_grad afterwards).
        ra1 = state_ref[0]
        ra2 = state_ref[2]
        scale1 = 1.0 + 0.1 * (ra1 - 1.0)
        scale2 = 1.0 + 0.1 * (ra2 - 1.0)

        x = x_ref[...].astype(jnp.float32)           # (TB, 2)
        w1 = w1_ref[...].astype(jnp.float32)         # (2, M)
        b1 = b1_ref[...].astype(jnp.float32)         # (1, M)

        # linear1: K=2 contraction as two broadcast MACs (VPU), then activation.
        h = x[:, 0:1] * w1[0:1, :] + x[:, 1:2] * w1[1:2, :] + b1
        h = activation(h)                            # (TB, M)

        # eater1 statistics on its input (pre-amplification), f32 accumulation.
        nrm1 = jnp.sqrt(jnp.sum(h * h, axis=1, keepdims=True))       # (TB, 1)
        acc_ref[:, 0:1] += jnp.sum(nrm1, axis=0, keepdims=True)      # (1, 1)

        amp1 = h * scale1                            # eater1 amplified output

        # linear2: only 2 output features -> per-column lane reductions (VPU/XLU).
        w2 = w2_ref[...].astype(jnp.float32)         # (2, M)
        y0 = jnp.sum(amp1 * w2[0:1, :], axis=1, keepdims=True) + b2_ref[0]  # (TB,1)
        y1 = jnp.sum(amp1 * w2[1:2, :], axis=1, keepdims=True) + b2_ref[1]  # (TB,1)

        # eater2 statistics on its input (pre-amplification).
        nrm2 = jnp.sqrt(y0 * y0 + y1 * y1)                            # (TB, 1)
        acc_ref[:, 1:2] += jnp.sum(nrm2, axis=0, keepdims=True)       # (1, 1)

        # eater2 amplified output = model output (kept in the input dtype).
        out_ref[:, 0:1] = (y0 * scale2).astype(out_ref.dtype)
        out_ref[:, 1:2] = (y1 * scale2).astype(out_ref.dtype)

        @pl.when(i == pl.num_programs(0) - 1)
        def _finalize():
            n = consts_ref[0]
            max_points = consts_ref[1]
            inv_n = consts_ref[2]
            one = jnp.ones((1, 1), jnp.float32)

            def eater_update(ra_s, pc_s, norm_sum):
                a_n = norm_sum * inv_n                         # mean per-row L2 norm
                ra = one * ra_s
                pc = one * pc_s
                d = jnp.maximum(pc + n - max_points, 0.0)      # F.relu(M + N - Max)
                m_final = pc - d + n
                num = ra * (pc - d) + a_n * n
                safe = jnp.where(m_final > 0.0, m_final, one)
                a_final = jnp.where(m_final > 0.0, num / safe, one)
                return a_final, m_final

            a1, m1 = eater_update(state_ref[0], state_ref[1], acc_ref[:, 0:1])
            a2, m2 = eater_update(state_ref[2], state_ref[3], acc_ref[:, 1:2])
            state_out_ref[:, 0:1] = a1
            state_out_ref[:, 1:2] = m1
            state_out_ref[:, 2:3] = a2
            state_out_ref[:, 3:4] = m2

    return kernel


def model_xor2_eater_forward(x, params, eater_state, max_points, *,
                             activation=jax.nn.relu, block_b=None, training=True):
    """Fused forward pass.

    params      = (w1, b1, w2, b2):
        w1 : (2, middle)   == torch linear1.weight.T
        b1 : (middle,)
        w2 : (2, middle)   == torch linear2.weight  (out_features, in_features)
        b2 : (2,)
    eater_state = (running_avg1, point_count1, running_avg2, point_count2)

    Returns (output (B, 2), new_eater_state tuple).
    """
    w1, b1, w2, b2 = params
    B = x.shape[0]
    mid = w1.shape[1]

    if not training:
        # Eval mode: MagnitudeEater is the identity; run as plain XLA.
        h = activation(jnp.dot(x, w1, precision=jax.lax.Precision.HIGHEST) + b1[None, :])
        y = jnp.dot(h, w2.T, precision=jax.lax.Precision.HIGHEST) + b2[None, :]
        return y, eater_state

    if block_b is None:
        block_b = B if B <= 1024 else 1024
    if B % block_b != 0 or (block_b % 8 != 0 and block_b != B):
        block_b = B                                   # fall back to a single tile
    grid = (B // block_b,)

    consts = jnp.array([B, max_points, 1.0 / B], dtype=jnp.float32)
    state_in = jnp.stack([jnp.asarray(s, jnp.float32) for s in eater_state])
    b1r = jnp.reshape(b1, (1, mid)).astype(jnp.float32)
    b2s = jnp.reshape(b2, (2,)).astype(jnp.float32)

    out, state_out = pl.pallas_call(
        _make_fwd_kernel(activation),
        grid=grid,
        out_shape=(
            jax.ShapeDtypeStruct((B, 2), x.dtype),
            jax.ShapeDtypeStruct((1, 4), jnp.float32),
        ),
        in_specs=[
            pl.BlockSpec(memory_space=pltpu.SMEM),                # consts
            pl.BlockSpec(memory_space=pltpu.SMEM),                # eater buffers
            pl.BlockSpec(memory_space=pltpu.SMEM),                # b2
            pl.BlockSpec((block_b, 2), lambda i: (i, 0)),          # x tile
            pl.BlockSpec((2, mid), lambda i: (0, 0)),              # w1 (resident)
            pl.BlockSpec((1, mid), lambda i: (0, 0)),              # b1 (resident)
            pl.BlockSpec((2, mid), lambda i: (0, 0)),              # w2 (resident)
        ],
        out_specs=(
            pl.BlockSpec((block_b, 2), lambda i: (i, 0)),          # output tile
            pl.BlockSpec((1, 4), lambda i: (0, 0)),                # new buffers
        ),
        scratch_shapes=[pltpu.VMEM((1, 2), jnp.float32)],          # norm-sum accumulators
        compiler_params=pltpu.CompilerParams(
            dimension_semantics=("arbitrary",),   # batch axis carries the norm reduction
        ),
    )(consts, state_in, b2s, x, w1.astype(jnp.float32), b1r, w2.astype(jnp.float32))

    new_state = (state_out[0, 0], state_out[0, 1], state_out[0, 2], state_out[0, 3])
    return out, new_state


def _reference_forward(x, params, eater_state, max_points, activation=jax.nn.relu):
    """Pure-JAX mirror of the PyTorch Model_Xor2_Eater forward (training mode)."""
    w1, b1, w2, b2 = params
    ra1, pc1, ra2, pc2 = (jnp.float32(v) for v in eater_state)
    n = jnp.float32(x.shape[0])
    maxp = jnp.float32(max_points)

    def eater(v, ra, pc):
        amp = v + 0.1 * v * (ra - 1.0)
        a_n = jnp.mean(jnp.sqrt(jnp.sum(v.astype(jnp.float32) ** 2, axis=1)))
        d = jnp.maximum(pc + n - maxp, 0.0)
        m_final = pc - d + n
        num = ra * (pc - d) + a_n * n
        a_final = jnp.where(m_final > 0, num / jnp.where(m_final > 0, m_final, 1.0),
                            jnp.float32(1.0))
        return amp, a_final, m_final

    h = activation(jnp.dot(x, w1, precision=jax.lax.Precision.HIGHEST) + b1[None, :])
    amp1, ra1n, pc1n = eater(h, ra1, pc1)
    y = jnp.dot(amp1, w2.T, precision=jax.lax.Precision.HIGHEST) + b2[None, :]
    amp2, ra2n, pc2n = eater(y, ra2, pc2)
    return amp2, (ra1n, pc1n, ra2n, pc2n)


if __name__ == "__main__":
    key = jax.random.PRNGKey(0)
    kx, k1, k2 = jax.random.split(key, 3)

    B, middle, max_points = 128, 32, 100

    x = jax.random.normal(kx, (B, 2), dtype=jnp.float32)

    # linear1: kaiming_normal_(nonlinearity='relu'), fan_in=2 -> std = sqrt(2/2).
    w1 = jax.random.normal(k1, (2, middle), dtype=jnp.float32) * jnp.sqrt(2.0 / 2.0)
    b1 = jnp.zeros((middle,), dtype=jnp.float32)
    # linear2: xavier_normal_, std = sqrt(2/(fan_in+fan_out)); PyTorch (out, in) layout.
    w2 = jax.random.normal(k2, (2, middle), dtype=jnp.float32) * jnp.sqrt(2.0 / (middle + 2))
    b2 = jnp.zeros((2,), dtype=jnp.float32)
    params = (w1, b1, w2, b2)

    # MagnitudeEater.init() zeroes both buffers.
    eater_state = (jnp.float32(0.0), jnp.float32(0.0), jnp.float32(0.0), jnp.float32(0.0))

    out, new_state = model_xor2_eater_forward(
        x, params, eater_state, max_points,
        activation=jax.nn.relu, block_b=32, training=True)
    jax.block_until_ready((out, new_state))

    ref_out, ref_state = _reference_forward(x, params, eater_state, max_points,
                                            activation=jax.nn.relu)

    assert jnp.allclose(out, ref_out, atol=1e-5, rtol=1e-5), \
        float(jnp.max(jnp.abs(out - ref_out)))
    for got, want in zip(new_state, ref_state):
        assert jnp.allclose(got, want, atol=1e-5, rtol=1e-5), (float(got), float(want))

    print("KERNEL_OK")
</pallas_src>

<mosaic_0001>
module attributes {stable_mosaic.version = 11 : i64} {
  func.func @kernel(%arg0: i32, %arg1: memref<3xf32, #tpu.memory_space<smem>>, %arg2: memref<4xf32, #tpu.memory_space<smem>>, %arg3: memref<2xf32, #tpu.memory_space<smem>>, %arg4: memref<32x2xf32, #tpu.memory_space<vmem>>, %arg5: memref<2x32xf32, #tpu.memory_space<vmem>>, %arg6: memref<1x32xf32, #tpu.memory_space<vmem>>, %arg7: memref<2x32xf32, #tpu.memory_space<vmem>>, %arg8: memref<32x2xf32, #tpu.memory_space<vmem>>, %arg9: memref<1x4xf32, #tpu.memory_space<vmem>>, %arg10: memref<1x2xf32, #tpu.memory_space<vmem>>) attributes {dimension_semantics = [#tpu.dimension_semantics<arbitrary>], iteration_bounds = array<i64: 4>, scalar_prefetch = 0 : i64, scratch_operands = 1 : i64, tpu.core_type = #tpu.core_type<tc>, window_params = [{transform_indices = @transform_0, window_bounds = array<i64: 3>}, {transform_indices = @transform_1, window_bounds = array<i64: 4>}, {transform_indices = @transform_2, window_bounds = array<i64: 2>}, {transform_indices = @transform_3, window_bounds = array<i64: 32, 2>}, {pipeline_mode = #tpu.pipeline_mode<synchronous>, transform_indices = @transform_4, window_bounds = array<i64: 2, 32>}, {pipeline_mode = #tpu.pipeline_mode<synchronous>, transform_indices = @transform_5, window_bounds = array<i64: 1, 32>}, {pipeline_mode = #tpu.pipeline_mode<synchronous>, transform_indices = @transform_6, window_bounds = array<i64: 2, 32>}, {transform_indices = @transform_7, window_bounds = array<i64: 32, 2>}, {pipeline_mode = #tpu.pipeline_mode<synchronous>, transform_indices = @transform_8, window_bounds = array<i64: 1, 4>}]} {
    %c0_i32 = arith.constant 0 : i32
    %0 = arith.cmpi eq, %arg0, %c0_i32 : i32
    %1 = arith.extui %0 : i1 to i32
    %c0_i32_0 = arith.constant 0 : i32
    %2 = arith.cmpi ne, %1, %c0_i32_0 : i32
    scf.if %2 {
      %cst_34 = arith.constant 0.000000e+00 : f32
      %75 = vector.broadcast %cst_34 : f32 to vector<1x2xf32>
      %c0_35 = arith.constant 0 : index
      %c0_36 = arith.constant 0 : index
      %76 = vector.load %arg10[%c0_35, %c0_36] : memref<1x2xf32, #tpu.memory_space<vmem>>, vector<1x2xf32>
      tpu.vector_store %arg10[%c0_35, %c0_36], %75 {strides = array<i32>} : memref<1x2xf32, #tpu.memory_space<vmem>>, vector<1x2xf32>,
    } else {
    }
    %c0 = arith.constant 0 : index
    %3 = memref.load %arg2[%c0] : memref<4xf32, #tpu.memory_space<smem>>
    %c2 = arith.constant 2 : index
    %4 = memref.load %arg2[%c2] : memref<4xf32, #tpu.memory_space<smem>>
    %cst = arith.constant 1.000000e+00 : f32
    %5 = arith.subf %3, %cst : f32
    %cst_1 = arith.constant 1.000000e-01 : f32
    %6 = arith.mulf %cst_1, %5 : f32
    %cst_2 = arith.constant 1.000000e+00 : f32
    %7 = arith.addf %cst_2, %6 : f32
    %cst_3 = arith.constant 1.000000e+00 : f32
    %8 = arith.subf %4, %cst_3 : f32
    %cst_4 = arith.constant 1.000000e-01 : f32
    %9 = arith.mulf %cst_4, %8 : f32
    %cst_5 = arith.constant 1.000000e+00 : f32
    %10 = arith.addf %cst_5, %9 : f32
    %c0_6 = arith.constant 0 : index
    %c0_7 = arith.constant 0 : index
    %11 = vector.load %arg4[%c0_6, %c0_7] : memref<32x2xf32, #tpu.memory_space<vmem>>, vector<32x2xf32>
    %c0_8 = arith.constant 0 : index
    %c0_9 = arith.constant 0 : index
    %12 = vector.load %arg5[%c0_8, %c0_9] : memref<2x32xf32, #tpu.memory_space<vmem>>, vector<2x32xf32>
    %c0_10 = arith.constant 0 : index
    %c0_11 = arith.constant 0 : index
    %13 = vector.load %arg6[%c0_10, %c0_11] : memref<1x32xf32, #tpu.memory_space<vmem>>, vector<1x32xf32>
    %14 = vector.extract_strided_slice %11 {offsets = [0, 0], sizes = [32, 1], strides = [1, 1]} : vector<32x2xf32> to vector<32x1xf32>
    %15 = vector.extract_strided_slice %12 {offsets = [0, 0], sizes = [1, 32], strides = [1, 1]} : vector<2x32xf32> to vector<1x32xf32>
    %16 = vector.broadcast %14 : vector<32x1xf32> to vector<32x32xf32>
    %17 = vector.broadcast %15 : vector<1x32xf32> to vector<32x32xf32>
    %18 = arith.mulf %16, %17 : vector<32x32xf32>
    %19 = vector.extract_strided_slice %11 {offsets = [0, 1], sizes = [32, 1], strides = [1, 1]} : vector<32x2xf32> to vector<32x1xf32>
    %20 = vector.extract_strided_slice %12 {offsets = [1, 0], sizes = [1, 32], strides = [1, 1]} : vector<2x32xf32> to vector<1x32xf32>
    %21 = vector.broadcast %19 : vector<32x1xf32> to vector<32x32xf32>
    %22 = vector.broadcast %20 : vector<1x32xf32> to vector<32x32xf32>
    %23 = arith.mulf %21, %22 : vector<32x32xf32>
    %24 = arith.addf %18, %23 : vector<32x32xf32>
    %25 = vector.broadcast %13 : vector<1x32xf32> to vector<32x32xf32>
    %26 = arith.addf %24, %25 : vector<32x32xf32>
    %cst_12 = arith.constant 0.000000e+00 : f32
    %27 = vector.broadcast %cst_12 : f32 to vector<32x32xf32>
    %28 = arith.maximumf %26, %27 : vector<32x32xf32>
    %29 = arith.mulf %28, %28 : vector<32x32xf32>
    %cst_13 = arith.constant dense<0.000000e+00> : vector<32xf32>
    %30 = vector.multi_reduction <add>, %29, %cst_13 [1] : vector<32x32xf32> to vector<32xf32>
    %31 = vector.shape_cast %30 : vector<32xf32> to vector<32x1xf32>
    %32 = math.sqrt %31 : vector<32x1xf32>
    %c0_14 = arith.constant 0 : index
    %c0_15 = arith.constant 0 : index
    %33 = vector.load %arg10[%c0_14, %c0_15] : memref<1x2xf32, #tpu.memory_space<vmem>>, vector<1x1xf32>
    %cst_16 = arith.constant dense<0.000000e+00> : vector<1xf32>
    %34 = vector.multi_reduction <add>, %32, %cst_16 [0] : vector<32x1xf32> to vector<1xf32>
    %35 = vector.shape_cast %34 : vector<1xf32> to vector<1x1xf32>
    %36 = arith.addf %33, %35 : vector<1x1xf32>
    %c0_17 = arith.constant 0 : index
    %c0_18 = arith.constant 0 : index
    %37 = vector.load %arg10[%c0_17, %c0_18] : memref<1x2xf32, #tpu.memory_space<vmem>>, vector<1x1xf32>
    tpu.vector_store %arg10[%c0_17, %c0_18], %36 {strides = array<i32>} : memref<1x2xf32, #tpu.memory_space<vmem>>, vector<1x1xf32>,
    %38 = vector.broadcast %7 : f32 to vector<32x32xf32>
    %39 = arith.mulf %28, %38 : vector<32x32xf32>
    %c0_19 = arith.constant 0 : index
    %c0_20 = arith.constant 0 : index
    %40 = vector.load %arg7[%c0_19, %c0_20] : memref<2x32xf32, #tpu.memory_space<vmem>>, vector<2x32xf32>
    %41 = vector.extract_strided_slice %40 {offsets = [0, 0], sizes = [1, 32], strides = [1, 1]} : vector<2x32xf32> to vector<1x32xf32>
    %42 = vector.broadcast %41 : vector<1x32xf32> to vector<32x32xf32>
    %43 = arith.mulf %39, %42 : vector<32x32xf32>
    %cst_21 = arith.constant dense<0.000000e+00> : vector<32xf32>
    %44 = vector.multi_reduction <add>, %43, %cst_21 [1] : vector<32x32xf32> to vector<32xf32>
    %45 = vector.shape_cast %44 : vector<32xf32> to vector<32x1xf32>
    %c0_22 = arith.constant 0 : index
    %46 = memref.load %arg3[%c0_22] : memref<2xf32, #tpu.memory_space<smem>>
    %47 = vector.broadcast %46 : f32 to vector<32x1xf32>
    %48 = arith.addf %45, %47 : vector<32x1xf32>
    %49 = vector.extract_strided_slice %40 {offsets = [1, 0], sizes = [1, 32], strides = [1, 1]} : vector<2x32xf32> to vector<1x32xf32>
    %50 = vector.broadcast %49 : vector<1x32xf32> to vector<32x32xf32>
    %51 = arith.mulf %39, %50 : vector<32x32xf32>
    %cst_23 = arith.constant dense<0.000000e+00> : vector<32xf32>
    %52 = vector.multi_reduction <add>, %51, %cst_23 [1] : vector<32x32xf32> to vector<32xf32>
    %53 = vector.shape_cast %52 : vector<32xf32> to vector<32x1xf32>
    %c1 = arith.constant 1 : index
    %54 = memref.load %arg3[%c1] : memref<2xf32, #tpu.memory_space<smem>>
    %55 = vector.broadcast %54 : f32 to vector<32x1xf32>
    %56 = arith.addf %53, %55 : vector<32x1xf32>
    %57 = arith.mulf %48, %48 : vector<32x1xf32>
    %58 = arith.mulf %56, %56 : vector<32x1xf32>
    %59 = arith.addf %57, %58 : vector<32x1xf32>
    %60 = math.sqrt %59 : vector<32x1xf32>
    %c0_24 = arith.constant 0 : index
    %c1_25 = arith.constant 1 : index
    %61 = vector.load %arg10[%c0_24, %c1_25] : memref<1x2xf32, #tpu.memory_space<vmem>>, vector<1x1xf32>
    %cst_26 = arith.constant dense<0.000000e+00> : vector<1xf32>
    %62 = vector.multi_reduction <add>, %60, %cst_26 [0] : vector<32x1xf32> to vector<1xf32>
    %63 = vector.shape_cast %62 : vector<1xf32> to vector<1x1xf32>
    %64 = arith.addf %61, %63 : vector<1x1xf32>
    %c0_27 = arith.constant 0 : index
    %c1_28 = arith.constant 1 : index
    %65 = vector.load %arg10[%c0_27, %c1_28] : memref<1x2xf32, #tpu.memory_space<vmem>>, vector<1x1xf32>
    tpu.vector_store %arg10[%c0_27, %c1_28], %64 {strides = array<i32>} : memref<1x2xf32, #tpu.memory_space<vmem>>, vector<1x1xf32>,
    %66 = vector.broadcast %10 : f32 to vector<32x1xf32>
    %67 = arith.mulf %48, %66 : vector<32x1xf32>
    %c0_29 = arith.constant 0 : index
    %c0_30 = arith.constant 0 : index
    %68 = vector.load %arg8[%c0_29, %c0_30] : memref<32x2xf32, #tpu.memory_space<vmem>>, vector<32x1xf32>
    tpu.vector_store %arg8[%c0_29, %c0_30], %67 {strides = array<i32>} : memref<32x2xf32, #tpu.memory_space<vmem>>, vector<32x1xf32>,
    %69 = vector.broadcast %10 : f32 to vector<32x1xf32>
    %70 = arith.mulf %56, %69 : vector<32x1xf32>
    %c0_31 = arith.constant 0 : index
    %c1_32 = arith.constant 1 : index
    %71 = vector.load %arg8[%c0_31, %c1_32] : memref<32x2xf32, #tpu.memory_space<vmem>>, vector<32x1xf32>
    tpu.vector_store %arg8[%c0_31, %c1_32], %70 {strides = array<i32>} : memref<32x2xf32, #tpu.memory_space<vmem>>, vector<32x1xf32>,
    %c3_i32 = arith.constant 3 : i32
    %72 = arith.cmpi eq, %arg0, %c3_i32 : i32
    %73 = arith.extui %72 : i1 to i32
    %c0_i32_33 = arith.constant 0 : i32
    %74 = arith.cmpi ne, %73, %c0_i32_33 : i32
    scf.if %74 {
      %c0_34 = arith.constant 0 : index
      %75 = memref.load %arg1[%c0_34] : memref<3xf32, #tpu.memory_space<smem>>
      %c1_35 = arith.constant 1 : index
      %76 = memref.load %arg1[%c1_35] : memref<3xf32, #tpu.memory_space<smem>>
      %c2_36 = arith.constant 2 : index
      %77 = memref.load %arg1[%c2_36] : memref<3xf32, #tpu.memory_space<smem>>
      %cst_37 = arith.constant 1.000000e+00 : f32
      %78 = vector.broadcast %cst_37 : f32 to vector<1x1xf32>
      %c0_38 = arith.constant 0 : index
      %79 = memref.load %arg2[%c0_38] : memref<4xf32, #tpu.memory_space<smem>>
      %c1_39 = arith.constant 1 : index
      %80 = memref.load %arg2[%c1_39] : memref<4xf32, #tpu.memory_space<smem>>
      %c0_40 = arith.constant 0 : index
      %c0_41 = arith.constant 0 : index
      %81 = vector.load %arg10[%c0_40, %c0_41] : memref<1x2xf32, #tpu.memory_space<vmem>>, vector<1x1xf32>
      %82 = vector.broadcast %77 : f32 to vector<1x1xf32>
      %83 = arith.mulf %81, %82 : vector<1x1xf32>
      %84 = vector.broadcast %79 : f32 to vector<1x1xf32>
      %85 = arith.mulf %78, %84 : vector<1x1xf32>
      %86 = vector.broadcast %80 : f32 to vector<1x1xf32>
      %87 = arith.mulf %78, %86 : vector<1x1xf32>
      %88 = vector.broadcast %75 : f32 to vector<1x1xf32>
      %89 = arith.addf %87, %88 : vector<1x1xf32>
      %90 = vector.broadcast %76 : f32 to vector<1x1xf32>
      %91 = arith.subf %89, %90 : vector<1x1xf32>
      %cst_42 = arith.constant 0.000000e+00 : f32
      %92 = vector.broadcast %cst_42 : f32 to vector<1x1xf32>
      %93 = arith.maximumf %91, %92 : vector<1x1xf32>
      %94 = arith.subf %87, %93 : vector<1x1xf32>
      %95 = vector.broadcast %75 : f32 to vector<1x1xf32>
      %96 = arith.addf %94, %95 : vector<1x1xf32>
      %97 = arith.subf %87, %93 : vector<1x1xf32>
      %98 = arith.mulf %85, %97 : vector<1x1xf32>
      %99 = vector.broadcast %75 : f32 to vector<1x1xf32>
      %100 = arith.mulf %83, %99 : vector<1x1xf32>
      %101 = arith.addf %98, %100 : vector<1x1xf32>
      %cst_43 = arith.constant 0.000000e+00 : f32
      %102 = vector.broadcast %cst_43 : f32 to vector<1x1xf32>
      %103 = arith.cmpf ogt, %96, %102 : vector<1x1xf32>
      %104 = arith.select %103, %96, %78 : vector<1x1xi1>, vector<1x1xf32>
      %cst_44 = arith.constant 0.000000e+00 : f32
      %105 = vector.broadcast %cst_44 : f32 to vector<1x1xf32>
      %106 = arith.cmpf ogt, %96, %105 : vector<1x1xf32>
      %107 = arith.divf %101, %104 : vector<1x1xf32>
      %108 = arith.select %106, %107, %78 : vector<1x1xi1>, vector<1x1xf32>
      %c2_45 = arith.constant 2 : index
      %109 = memref.load %arg2[%c2_45] : memref<4xf32, #tpu.memory_space<smem>>
      %c3 = arith.constant 3 : index
      %110 = memref.load %arg2[%c3] : memref<4xf32, #tpu.memory_space<smem>>
      %c0_46 = arith.constant 0 : index
      %c1_47 = arith.constant 1 : index
      %111 = vector.load %arg10[%c0_46, %c1_47] : memref<1x2xf32, #tpu.memory_space<vmem>>, vector<1x1xf32>
      %112 = vector.broadcast %77 : f32 to vector<1x1xf32>
      %113 = arith.mulf %111, %112 : vector<1x1xf32>
      %114 = vector.broadcast %109 : f32 to vector<1x1xf32>
      %115 = arith.mulf %78, %114 : vector<1x1xf32>
      %116 = vector.broadcast %110 : f32 to vector<1x1xf32>
      %117 = arith.mulf %78, %116 : vector<1x1xf32>
      %118 = vector.broadcast %75 : f32 to vector<1x1xf32>
      %119 = arith.addf %117, %118 : vector<1x1xf32>
      %120 = vector.broadcast %76 : f32 to vector<1x1xf32>
      %121 = arith.subf %119, %120 : vector<1x1xf32>
      %cst_48 = arith.constant 0.000000e+00 : f32
      %122 = vector.broadcast %cst_48 : f32 to vector<1x1xf32>
      %123 = arith.maximumf %121, %122 : vector<1x1xf32>
      %124 = arith.subf %117, %123 : vector<1x1xf32>
      %125 = vector.broadcast %75 : f32 to vector<1x1xf32>
      %126 = arith.addf %124, %125 : vector<1x1xf32>
      %127 = arith.subf %117, %123 : vector<1x1xf32>
      %128 = arith.mulf %115, %127 : vector<1x1xf32>
      %129 = vector.broadcast %75 : f32 to vector<1x1xf32>
      %130 = arith.mulf %113, %129 : vector<1x1xf32>
      %131 = arith.addf %128, %130 : vector<1x1xf32>
      %cst_49 = arith.constant 0.000000e+00 : f32
      %132 = vector.broadcast %cst_49 : f32 to vector<1x1xf32>
      %133 = arith.cmpf ogt, %126, %132 : vector<1x1xf32>
      %134 = arith.select %133, %126, %78 : vector<1x1xi1>, vector<1x1xf32>
      %cst_50 = arith.constant 0.000000e+00 : f32
      %135 = vector.broadcast %cst_50 : f32 to vector<1x1xf32>
      %136 = arith.cmpf ogt, %126, %135 : vector<1x1xf32>
      %137 = arith.divf %131, %134 : vector<1x1xf32>
      %138 = arith.select %136, %137, %78 : vector<1x1xi1>, vector<1x1xf32>
      %c0_51 = arith.constant 0 : index
      %c0_52 = arith.constant 0 : index
      %139 = vector.load %arg9[%c0_51, %c0_52] : memref<1x4xf32, #tpu.memory_space<vmem>>, vector<1x1xf32>
      tpu.vector_store %arg9[%c0_51, %c0_52], %108 {strides = array<i32>} : memref<1x4xf32, #tpu.memory_space<vmem>>, vector<1x1xf32>,
      %c0_53 = arith.constant 0 : index
      %c1_54 = arith.constant 1 : index
      %140 = vector.load %arg9[%c0_53, %c1_54] : memref<1x4xf32, #tpu.memory_space<vmem>>, vector<1x1xf32>
      tpu.vector_store %arg9[%c0_53, %c1_54], %96 {strides = array<i32>} : memref<1x4xf32, #tpu.memory_space<vmem>>, vector<1x1xf32>,
      %c0_55 = arith.constant 0 : index
      %c2_56 = arith.constant 2 : index
      %141 = vector.load %arg9[%c0_55, %c2_56] : memref<1x4xf32, #tpu.memory_space<vmem>>, vector<1x1xf32>
      tpu.vector_store %arg9[%c0_55, %c2_56], %138 {strides = array<i32>} : memref<1x4xf32, #tpu.memory_space<vmem>>, vector<1x1xf32>,
      %c0_57 = arith.constant 0 : index
      %c3_58 = arith.constant 3 : index
      %142 = vector.load %arg9[%c0_57, %c3_58] : memref<1x4xf32, #tpu.memory_space<vmem>>, vector<1x1xf32>
      tpu.vector_store %arg9[%c0_57, %c3_58], %126 {strides = array<i32>} : memref<1x4xf32, #tpu.memory_space<vmem>>, vector<1x1xf32>,
    } else {
    }
    return
  }
  func.func @transform_0(%arg0: i32) -> i32 {
    %c0_i32 = arith.constant 0 : i32
    %c0_i32_0 = arith.constant 0 : i32
    return %c0_i32 : i32
  }
  func.func @transform_1(%arg0: i32) -> i32 {
    %c0_i32 = arith.constant 0 : i32
    %c0_i32_0 = arith.constant 0 : i32
    return %c0_i32 : i32
  }
  func.func @transform_2(%arg0: i32) -> i32 {
    %c0_i32 = arith.constant 0 : i32
    %c0_i32_0 = arith.constant 0 : i32
    return %c0_i32 : i32
  }
  func.func @transform_3(%arg0: i32) -> (i32, i32) {
    %c0_i32 = arith.constant 0 : i32
    %c0_i32_0 = arith.constant 0 : i32
    return %arg0, %c0_i32 : i32, i32
  }
  func.func @transform_4(%arg0: i32) -> (i32, i32) {
    %c0_i32 = arith.constant 0 : i32
    %c0_i32_0 = arith.constant 0 : i32
    %c0_i32_1 = arith.constant 0 : i32
    return %c0_i32, %c0_i32_0 : i32, i32
  }
  func.func @transform_5(%arg0: i32) -> (i32, i32) {
    %c0_i32 = arith.constant 0 : i32
    %c0_i32_0 = arith.constant 0 : i32
    %c0_i32_1 = arith.constant 0 : i32
    return %c0_i32, %c0_i32_0 : i32, i32
  }
  func.func @transform_6(%arg0: i32) -> (i32, i32) {
    %c0_i32 = arith.constant 0 : i32
    %c0_i32_0 = arith.constant 0 : i32
    %c0_i32_1 = arith.constant 0 : i32
    return %c0_i32, %c0_i32_0 : i32, i32
  }
  func.func @transform_7(%arg0: i32) -> (i32, i32) {
    %c0_i32 = arith.constant 0 : i32
    %c0_i32_0 = arith.constant 0 : i32
    return %arg0, %c0_i32 : i32, i32
  }
  func.func @transform_8(%arg0: i32) -> (i32, i32) {
    %c0_i32 = arith.constant 0 : i32
    %c0_i32_0 = arith.constant 0 : i32
    %c0_i32_1 = arith.constant 0 : i32
    return %c0_i32, %c0_i32_0 : i32, i32
  }
}

</mosaic_0001>

<bundles_post_ra>
// kernel: tpu_custom_call.1
= control target key start
LH: loop header
LB: loop body
LE: loop exit
PB: predicated region body
PF: predicated region fallthrough
CT: control target
= control target key end

     0   :  { %14 = vsyncpa [#allocation5], 0  ;;  %s1277_s0 = inlined_call_operand.vmem [shape: f32[3], index: 0, kind: input, shape index: {}]   ;;  %s1278_s1 = inlined_call_operand.vmem [shape: f32[4], index: 1, kind: input, shape index: {}]   ;;  %s1279_s2 = inlined_call_operand.vmem [shape: f32[2], index: 2, kind: input, shape index: {}]   ;;  %s1280_s3 = inlined_call_operand.vmem [shape: f32[128,2], index: 3, kind: input, shape index: {}]   ;;  %s1281_s4 = inlined_call_operand.vmem [shape: f32[2,32], index: 4, kind: input, shape index: {}]   ;;  %s1282_s5 = inlined_call_operand.vmem [shape: f32[1,32], index: 5, kind: input, shape index: {}]   ;;  %s1283_s6 = inlined_call_operand.vmem [shape: f32[2,32], index: 6, kind: input, shape index: {}]   ;;  %s1284_s7 = inlined_call_operand.vmem [shape: f32[128,2], index: 7, kind: output, shape index: {0}]   ;;  %s1285_s8 = inlined_call_operand.hbm [shape: f32[1,4], index: 8, kind: output, shape index: {1}]  }
   0x1   :  { %15 = vsyncpa [#allocation7], 0 }
   0x2   :  { %16 = vsyncpa [#allocation4], 0  ;;  %s1097_s27 = smov 0  }
   0x3 LB: > { %s1103_s28 = sadd.s32 4294967295, %s1042_s27   ;;  %p847_p0 = scmp.ge.s32.totalorder %s1042_s27, 1  ;;  %s1042_s27 = sphi %s1097_s27, %s22_s27  }
   0x4   : > { %p226_p1 = scmp.lt.s32.totalorder %s1042_s27, 5  ;;  %p848_p2 = scmp.ne.s32.totalorder %s1103_s28, 0 }
   0x5   : > { %s248_s9 = sshll.u32 %s1278_s1, 4  ;;  %p901_p4 = scmp.eq.s32.totalorder %s1103_s28, 0  ;;  %s249_s9 = int_to_ptr.vmem [resolvable:$true] %s248_s9 }
   0x6   : > { %p1111_p3 = pnand %p847_p0, %p226_p1  ;;  %s238_s13 = sshll.u32 %s1277_s0, 4  ;;  %s239_s13 = int_to_ptr.vmem [resolvable:$true] %s238_s13 }
   0x7   : > { %s258_s16 = sshll.u32 %s1279_s2, 4  ;;  %s1044_s17 = smov [#allocation6]   ;;  %s259_s16 = int_to_ptr.vmem [resolvable:$true] %s258_s16 }
   0x8   : > { %p891_p5 = pneg %p1111_p3  ;;  %s1045_s18 = smov [#allocation3]  }
   0x9   : > { %s1046_s19 = smov [#allocation8]  }
   0xa   : > { %p892_p6 = pnand %p901_p4, %p891_p5  ;;  %289 = sbr.rel (%p1111_p3) target bundleno = 513 (0x201), region = 48 }
   0xc   : > { %897 = dma.vmem_to_smem (!%p892_p6), %s249_s9, 16, %s1044_s17, [#allocation7]  }
   0xd   : > { %894 = dma.vmem_to_smem (!%p892_p6), %s239_s13, 16, %s1045_s18, [#allocation5]  }
   0xe   : > { %900 = dma.vmem_to_smem (!%p892_p6), %s259_s16, 16, %s1046_s19, [#allocation7]  }
   0xf   : > { %1029 = dma.done.wait (%p901_p4), [#allocation5], 16  }
  0x10   : > { %1031 = vsyncadd (%p901_p4), [#allocation5], 4294967280 }
  0x11   : > { %1033 = dma.done.wait (%p901_p4), [#allocation7], 32  }
  0x12   : > { %1035 = vsyncadd (%p901_p4), [#allocation7], 4294967264 }
  0x13   : > { %306 = sfence }
  0x14   : > { %s856_s20 = sshll.u32 %s1103_s28, 2 }
  0x15   : > { %p336_p7 = scmp.lt.s32.totalorder %s856_s20, 15  ;;  %350 = sbr.rel (%p848_p2) target bundleno = 28 (0x1c), region = 64 }
  0x17   : > { %s1288_s20 = smov (!%p336_p7, %s856_s20), 15 }
  0x18   : > { %s857_s21 = sshll.u32 %s1288_s20, 3 }
  0x19   : > { %s339_s24 = scalar_lea.vmem %s1280_s3, %s857_s21  ;;  %s1143_s29 = scalar_lea.vmem %s1284_s7, %s857_s21 }
  0x1a   : > { %vm351_vm0 = vcmask 8192   ;;  %v1047_v0 = vmov 0.0  }
  0x1b   : > { %352 = vst.msk [vmem:[#allocation2] sm:$0x1] %vm351_vm0, %v1047_v0 }
  0x1c PF: > { %v361_v1 = vld [vmem:[%s339_s24] sm:$0xff]  ;;  %v1048_v2 = vmov 1   ;;  %v1049_v3 = vmov 0   ;;  %v363_v4 = vld [vmem:[%s339_s24 + $0x10] sm:$0xff]  ;;  %v362_v5 = vld [vmem:[%s339_s24 + $0x8] sm:$0xff]  ;;  %s353_s10 = sld [smem:[#allocation6]] }
  0x1d   : > { %926 = vset.pattern.permute.xlu1 %v1048_v2  ;;  %925 = vset.pattern.permute.xlu0 %v1049_v3  ;;  %v364_v6 = vld [vmem:[%s339_s24 + $0x18] sm:$0xff]  ;;  %v365_v8 = vld [vmem:[%s1281_s4] sm:$0x3]  ;;  %vm432_vm1 = vcmask 261120   ;;  %s861_s18 = sld [smem:[#allocation6 + $0x2]]  ;;  %vm636_vm2 = vcmask 7168  }
  0x1e   : > { %393 = vperm.xlu1 %926, %v361_v1   ;;  %369 = vperm.xlu0 %925, %v361_v1   ;;  %v387_v9 = vperm.slane %v365_v8, 0  ;;  %v408_v10 = vperm.slane %v365_v8, 1  ;;  %v930_v13 = vld [vmem:[%s1282_s5] ss:$0 sm:$0xff]  ;;  %s529_s20 = sld [smem:[#allocation8]]  ;;  %vm645_vm5 = vcmask 15368  }
  0x1f   : > { %927 = vset.pattern.permute.xlu2 %v1049_v3  ;;  %v511_v25 = vld [vmem:[%s1283_s6] sm:$0x3]  ;;  %s864_s21 = sld [smem:[#allocation8 + $0x1]]  ;;  %vm504_vm12 = vcmask 0   ;;  %p865_p8 = scmp.ne.s32.totalorder %s1103_s28, 3 }
  0x20   : > { %379 = vperm.xlu2 %927, %v363_v4   ;;  %v535_v29 = vperm.slane %v511_v25, 1  ;;  %v512_v54 = vperm.slane %v511_v25, 0  ;;  %s654_s24 = sld [smem:[#allocation3]] (!%p865_p8)  ;;  %s1050_s11 = smov (!%p865_p8), 1  }
  0x21   : > { %s866_s25 = sld [smem:[#allocation3 + $0x1]] (!%p865_p8) }
  0x22   : > { %s862_s13 = sadd.f32 -1.0, %s353_s10 }
  0x23   : > { %s863_s19 = sadd.f32 -1.0, %s861_s18 }
  0x24   : > { %s356_s14 = smul.f32 0.1, %s862_s13  ;;  %s870_s26 = sld [smem:[#allocation6 + $0x3]] (!%p865_p8) }
  0x25   : > { %s359_s22 = smul.f32 0.1, %s863_s19  ;;  %s867_s30 = sld [smem:[#allocation3 + $0x2]] (!%p865_p8) }
  0x26   : > { %397 = vperm.xlu1 %926, %v362_v5   ;;  %374 = vperm.xlu0 %925, %v362_v5   ;;  %s357_s15 = sadd.f32 1.0, %s356_s14 }
  0x27   : > { %s360_s23 = sadd.f32 1.0, %s359_s22 }
  0x28   : > { %928 = vset.pattern.permute.xlu2 %v1048_v2  ;;  %v506_v27 = vstv %s357_s15  ;;  %s869_s9 = sld [smem:[#allocation6 + $0x2]] (!%p865_p8) }
  0x29   : > { %401 = vperm.xlu2 %928, %v363_v4   ;;  %s657_s10 = sld [smem:[#allocation6]] (!%p865_p8) }
  0x2e   : > { %405 = vperm.xlu1 %926, %v364_v6   ;;  %384 = vperm.xlu0 %925, %v364_v6  }
  0x36   : > { %929 = vset.pattern.permute.xlu0 %v1048_v2 }
  0x7a   : > { %v380_v7 = vpop.permute.xlu2 %379 }
  0x7b   : > { %v390_v11 = vmul.f32 %v387_v9, %v380_v7 }
  0x83   : > { %v402_v12 = vpop.permute.xlu2 %401 }
  0x84   : > { %v411_v14 = vmul.f32 %v408_v10, %v402_v12 }
  0x86   : > { %v415_v15 = vadd.f32 %v411_v14, %v390_v11 }
  0x88   : > { %v422_v16 = vadd.f32 %v930_v13, %v415_v15 }
  0x8a   : > { %v426_v17 = vmax.f32 %v422_v16, 0.0 }
  0x8c   : > { %v430_v18 = vmul.f32 %v426_v17, %v426_v17  ;;  %v509_v39 = vmul.f32 %v506_v27, %v426_v17 }
  0x8e   : > { %v439_v19 = vsel %vm432_vm1, %v430_v18, 0.0  ;;  %v538_v43 = vmul.f32 %v535_v29, %v509_v39  ;;  %v515_v60 = vmul.f32 %v512_v54, %v509_v39 }
  0x8f   : > { %440 = vadd.xlane.f32.xlu1 %v439_v19 }
  0x90   : > { %v394_v20 = vpop.permute.xlu1 %393  ;;  %v370_v21 = vpop.permute.xlu0 %369  ;;  %v546_v51 = vsel %vm432_vm1, %v538_v43, 0.0  ;;  %v523_v62 = vsel %vm432_vm1, %v515_v60, 0.0 }
  0x91   : > { %v409_v22 = vmul.f32 %v408_v10, %v394_v20  ;;  %v388_v23 = vmul.f32 %v387_v9, %v370_v21  ;;  %v1176_v21 = vstv %s529_s20 }
  0x93   : > { %v413_v24 = vadd.f32 %v409_v22, %v388_v23 }
  0x95   : > { %v420_v26 = vadd.f32 %v930_v13, %v413_v24 }
  0x97   : > { %v424_v28 = vmax.f32 %v420_v26, 0.0  ;;  %v1180_v26 = vstv %s864_s21 }
  0x98   : > { %v398_v30 = vpop.permute.xlu1 %397  ;;  %v375_v31 = vpop.permute.xlu0 %374 }
  0x99   : > { %v410_v32 = vmul.f32 %v408_v10, %v398_v30  ;;  %v389_v33 = vmul.f32 %v387_v9, %v375_v31  ;;  %v428_v34 = vmul.f32 %v424_v28, %v424_v28  ;;  %v507_v35 = vmul.f32 %v506_v27, %v424_v28 }
  0x9a   : > { %v1186_v30 = vstv %s360_s23 }
  0x9b   : > { %v414_v36 = vadd.f32 %v410_v32, %v389_v33  ;;  %v433_v37 = vsel %vm432_vm1, %v428_v34, 0.0  ;;  %v536_v38 = vmul.f32 %v535_v29, %v507_v35  ;;  %v513_v61 = vmul.f32 %v512_v54, %v507_v35 }
  0x9c   : > { %434 = vadd.xlane.f32.xlu2 %v433_v37 }
  0x9d   : > { %v421_v40 = vadd.f32 %v930_v13, %v414_v36  ;;  %v540_v41 = vsel %vm432_vm1, %v536_v38, 0.0  ;;  %v517_v63 = vsel %vm432_vm1, %v513_v61, 0.0 }
  0x9e   : > { %541 = vadd.xlane.f32.xlu1 %v540_v41 }
  0x9f   : > { %v425_v42 = vmax.f32 %v421_v40, 0.0 }
  0xa0   : > { %v406_v44 = vpop.permute.xlu1 %405  ;;  %v385_v45 = vpop.permute.xlu0 %384 }
  0xa1   : > { %v412_v46 = vmul.f32 %v408_v10, %v406_v44  ;;  %v391_v47 = vmul.f32 %v387_v9, %v385_v45  ;;  %v429_v48 = vmul.f32 %v425_v42, %v425_v42  ;;  %v508_v52 = vmul.f32 %v506_v27, %v425_v42 }
  0xa3   : > { %v416_v49 = vadd.f32 %v412_v46, %v391_v47  ;;  %v436_v50 = vsel %vm432_vm1, %v429_v48, 0.0  ;;  %v514_v56 = vmul.f32 %v512_v54, %v508_v52  ;;  %v537_v2 = vmul.f32 %v535_v29, %v508_v52 }
  0xa4   : > { %437 = vadd.xlane.f32.xlu0 %v436_v50 }
  0xa5   : > { %v423_v53 = vadd.f32 %v930_v13, %v416_v49  ;;  %v520_v59 = vsel %vm432_vm1, %v514_v56, 0.0  ;;  %v543_v4 = vsel %vm432_vm1, %v537_v2, 0.0 }
  0xa6   : > { %547 = vadd.xlane.f32.xlu1 %v546_v51 }
  0xa7   : > { %v427_v55 = vmax.f32 %v423_v53, 0.0 }
  0xa9   : > { %v431_v57 = vmul.f32 %v427_v55, %v427_v55  ;;  %v510_v0 = vmul.f32 %v506_v27, %v427_v55 }
  0xab   : > { %v442_v58 = vsel %vm432_vm1, %v431_v57, 0.0  ;;  %v539_v1 = vmul.f32 %v535_v29, %v510_v0  ;;  %v516_v5 = vmul.f32 %v512_v54, %v510_v0 }
  0xac   : > { %443 = vadd.xlane.f32.xlu2 %v442_v58  ;;  %521 = vadd.xlane.f32.xlu0 %v520_v59 }
  0xad   : > { %v549_v3 = vsel %vm432_vm1, %v539_v1, 0.0  ;;  %v526_v6 = vsel %vm432_vm1, %v516_v5, 0.0 }
  0xb4   : > { %524 = vadd.xlane.f32.xlu0 %v523_v62  ;;  %518 = vadd.xlane.f32.xlu2 %v517_v63 }
  0xbc   : > { %550 = vadd.xlane.f32.xlu0 %v549_v3  ;;  %544 = vadd.xlane.f32.xlu2 %v543_v4 }
  0xc4   : > { %527 = vadd.xlane.f32.xlu2 %v526_v6 }
 0x102   : > { %v1168_v7 = vpop.xlane.xlu1 %440 }
 0x103   : > { %931 = vrsqrt.f32 %v1168_v7  ;;  %vm476_vm3 = vcmp.eq.f32.partialorder %v1168_v7, inf  ;;  %v479_v0 = vand.u32 2147483648, %v1168_v7  ;;  %vm478_vm9 = vcmp.eq.f32.partialorder %v1168_v7, 0.0 }
 0x109   : > { %v932_v8 = vpop.eup %931 }
 0x10a   : > { %v470_v10 = vmul.f32 %v932_v8, %v1168_v7 }
 0x10c   : > { %v471_v12 = vmul.f32 %v932_v8, %v470_v10 }
 0x10e   : > { %v472_v16 = vmul.f32 0.5, %v471_v12 }
 0x10f   : > { %v1171_v9 = vpop.xlane.xlu2 %434 }
 0x110   : > { %933 = vrsqrt.f32 %v1171_v9  ;;  %v473_v20 = vsub.f32 1.5, %v472_v16  ;;  %vm452_vm4 = vcmp.eq.f32.partialorder %v1171_v9, inf  ;;  %v455_v60 = vand.u32 2147483648, %v1171_v9 }
 0x111   : > { %v542_v17 = vpop.xlane.xlu1 %541  ;;  %vm454_vm8 = vcmp.eq.f32.partialorder %v1171_v9, 0.0 }
 0x112   : > { %v474_v29 = vmul.f32 %v932_v8, %v473_v20  ;;  %v554_v33 = vadd.f32 %v1180_v26, %v542_v17 }
 0x114   : > { %v475_v39 = vmul.f32 %v474_v29, %v1168_v7  ;;  %v562_v41 = vmul.f32 %v554_v33, %v554_v33  ;;  %v641_v1 = vmul.f32 %v1186_v30, %v554_v33 }
 0x116   : > { %v934_v11 = vpop.eup %933  ;;  %v477_v3 = vsel %vm476_vm3, %v1168_v7, %v475_v39 }
 0x117   : > { %v446_v13 = vmul.f32 %v934_v11, %v1171_v9  ;;  %v438_v14 = vpop.xlane.xlu0 %437  ;;  %v480_v10 = vsel %vm478_vm9, %v479_v0, %v477_v3 }
 0x118   : > { %935 = vrsqrt.f32 %v438_v14  ;;  %vm464_vm6 = vcmp.eq.f32.partialorder %v438_v14, inf  ;;  %vm466_vm7 = vcmp.eq.f32.partialorder %v438_v14, 0.0  ;;  %v467_v49 = vand.u32 2147483648, %v438_v14 }
 0x119   : > { %v447_v15 = vmul.f32 %v934_v11, %v446_v13  ;;  %v548_v31 = vpop.xlane.xlu1 %547 }
 0x11a   : > { %v556_v37 = vadd.f32 %v1180_v26, %v548_v31 }
 0x11b   : > { %v448_v18 = vmul.f32 0.5, %v447_v15 }
 0x11c   : > { %v564_v50 = vmul.f32 %v556_v37, %v556_v37  ;;  %v643_v58 = vmul.f32 %v1186_v30, %v556_v37 }
 0x11d   : > { %v449_v22 = vsub.f32 1.5, %v448_v18 }
 0x11e   : > { %v936_v19 = vpop.eup %935 }
 0x11f   : > { %v458_v23 = vmul.f32 %v936_v19, %v438_v14  ;;  %v1178_v24 = vpop.xlane.xlu2 %443  ;;  %v522_v25 = vpop.xlane.xlu0 %521  ;;  %v450_v32 = vmul.f32 %v934_v11, %v449_v22 }
 0x120   : > { %937 = vrsqrt.f32 %v1178_v24  ;;  %v1184_v28 = vadd.f32 %v1176_v21, %v522_v25  ;;  %vm488_vm10 = vcmp.eq.f32.partialorder %v1178_v24, inf  ;;  %v491_v7 = vand.u32 2147483648, %v1178_v24 }
 0x121   : > { %v459_v27 = vmul.f32 %v936_v19, %v458_v23  ;;  %v451_v40 = vmul.f32 %v450_v32, %v1171_v9  ;;  %vm490_vm11 = vcmp.eq.f32.partialorder %v1178_v24, 0.0 }
 0x122   : > { %v633_v35 = vmul.f32 %v1186_v30, %v1184_v28  ;;  %v559_v12 = vmul.f32 %v1184_v28, %v1184_v28 }
 0x123   : > { %v460_v34 = vmul.f32 0.5, %v459_v27  ;;  %v453_v56 = vsel %vm452_vm4, %v1171_v9, %v451_v40 }
 0x124   : > { %638 = vst.msk [vmem:[%s1143_s29 + $0x8] sm:$0xff] %vm636_vm2, %v633_v35  ;;  %v456_v4 = vsel %vm454_vm8, %v455_v60, %v453_v56 }
 0x125   : > { %v461_v36 = vsub.f32 1.5, %v460_v34 }
 0x126   : > { %v938_v38 = vpop.eup %937 }
 0x127   : > { %v462_v42 = vmul.f32 %v936_v19, %v461_v36  ;;  %v482_v43 = vmul.f32 %v938_v38, %v1178_v24  ;;  %v525_v44 = vpop.xlane.xlu0 %524  ;;  %v519_v45 = vpop.xlane.xlu2 %518 }
 0x128   : > { %v533_v46 = vadd.f32 %v1176_v21, %v525_v44  ;;  %v531_v47 = vadd.f32 %v1176_v21, %v519_v45 }
 0x129   : > { %v463_v48 = vmul.f32 %v462_v42, %v438_v14  ;;  %v483_v51 = vmul.f32 %v938_v38, %v482_v43 }
 0x12a   : > { %v560_v52 = vmul.f32 %v533_v46, %v533_v46  ;;  %v634_v53 = vmul.f32 %v1186_v30, %v533_v46  ;;  %v558_v54 = vmul.f32 %v531_v47, %v531_v47  ;;  %v632_v55 = vmul.f32 %v1186_v30, %v531_v47  ;;  %v493_v47 = vld [vmem:[#allocation2] sm:$0x1] }
 0x12b   : > { %v465_v57 = vsel %vm464_vm6, %v438_v14, %v463_v48  ;;  %v484_v59 = vmul.f32 0.5, %v483_v51 }
 0x12c   : > { %v468_v61 = vsel %vm466_vm7, %v467_v49, %v465_v57  ;;  %v1209_v62 = vadd.f32 %v564_v50, %v560_v52  ;;  %639 = vst.msk [vmem:[%s1143_s29 + $0x10] sm:$0xff] %vm636_vm2, %v634_v53  ;;  %v1213_v63 = vadd.f32 %v562_v41, %v558_v54 }
 0x12d   : > { %v485_v2 = vsub.f32 1.5, %v484_v59  ;;  %648 = vst.msk [vmem:[%s1143_s29 + $0x10] sm:$0xff] %vm645_vm5, %v643_v58  ;;  %v494_v5 = vadd.f32 %v468_v61, %v456_v4 }
 0x12e   : > { %939 = vrsqrt.f32 %v1209_v62  ;;  %637 = vst.msk [vmem:[%s1143_s29] sm:$0xff] %vm636_vm2, %v632_v55  ;;  %vm577_vm13 = vcmp.eq.f32.partialorder %v1213_v63, inf  ;;  %v580_v3 = vand.u32 2147483648, %v1213_v63  ;;  %vm579_vm0 = vcmp.eq.f32.partialorder %v1213_v63, 0.0 }
 0x12f   : > { %v486_v6 = vmul.f32 %v938_v38, %v485_v2  ;;  %941 = vrsqrt.f32 %v1213_v63  ;;  %646 = vst.msk [vmem:[%s1143_s29] sm:$0xff] %vm645_vm5, %v641_v1  ;;  %v545_v8 = vpop.xlane.xlu2 %544  ;;  %v495_v16 = vadd.f32 %v494_v5, %v480_v10  ;;  %v551_v17 = vpop.xlane.xlu0 %550  ;;  %vm601_vm1 = vcmp.eq.f32.partialorder %v1209_v62, inf }
 0x130   : > { %v555_v9 = vadd.f32 %v1180_v26, %v545_v8  ;;  %v557_v28 = vadd.f32 %v1180_v26, %v551_v17 }
 0x131   : > { %v487_v11 = vmul.f32 %v486_v6, %v1178_v24 }
 0x132   : > { %v563_v13 = vmul.f32 %v555_v9, %v555_v9  ;;  %v642_v14 = vmul.f32 %v1186_v30, %v555_v9  ;;  %v565_v36 = vmul.f32 %v557_v28, %v557_v28  ;;  %v644_v40 = vmul.f32 %v1186_v30, %v557_v28 }
 0x133   : > { %v489_v15 = vsel %vm488_vm10, %v1178_v24, %v487_v11  ;;  %v604_v11 = vand.u32 2147483648, %v1209_v62 }
 0x134   : > { %v940_v18 = vpop.eup %939  ;;  %v492_v19 = vsel %vm490_vm11, %v491_v7, %v489_v15  ;;  %v567_v20 = vadd.f32 %v563_v13, %v559_v12  ;;  %647 = vst.msk [vmem:[%s1143_s29 + $0x8] sm:$0xff] %vm645_vm5, %v642_v14 }
 0x135   : > { %v942_v22 = vpop.eup %941  ;;  %v496_v23 = vadd.f32 %v495_v16, %v492_v19  ;;  %v595_v25 = vmul.f32 %v940_v18, %v1209_v62 }
 0x136   : > { %v571_v27 = vmul.f32 %v942_v22, %v1213_v63  ;;  %943 = vrsqrt.f32 %v567_v20  ;;  %vm589_vm14 = vcmp.eq.f32.partialorder %v567_v20, inf  ;;  %vm591_vm15 = vcmp.eq.f32.partialorder %v567_v20, 0.0 }
 0x137   : > { %v497_v29 = vrot.slane %v496_v23, 4  ;;  %v528_v31 = vpop.xlane.xlu2 %527  ;;  %v596_v34 = vmul.f32 %v940_v18, %v595_v25  ;;  %v592_v60 = vand.u32 2147483648, %v567_v20 }
 0x138   : > { %v572_v24 = vmul.f32 %v942_v22, %v571_v27  ;;  %v534_v32 = vadd.f32 %v1176_v21, %v528_v31 }
 0x139   : > { %v498_v33 = vadd.f32 %v497_v29, %v496_v23  ;;  %v597_v43 = vmul.f32 0.5, %v596_v34 }
 0x13a   : > { %v573_v35 = vmul.f32 0.5, %v572_v24  ;;  %v561_v37 = vmul.f32 %v534_v32, %v534_v32  ;;  %v635_v38 = vmul.f32 %v1186_v30, %v534_v32 }
 0x13b   : > { %v499_v39 = vrot.slane %v498_v33, 2  ;;  %v598_v49 = vsub.f32 1.5, %v597_v43 }
 0x13c   : > { %v944_v41 = vpop.eup %943  ;;  %v569_v26 = vadd.f32 %v565_v36, %v561_v37  ;;  %640 = vst.msk [vmem:[%s1143_s29 + $0x18] sm:$0xff] %vm636_vm2, %v635_v38  ;;  %v574_v44 = vsub.f32 1.5, %v573_v35  ;;  %vm603_vm2 = vcmp.eq.f32.partialorder %v1209_v62, 0.0 }
 0x13d   : > { %v500_v42 = vadd.f32 %v499_v39, %v498_v33  ;;  %v583_v45 = vmul.f32 %v944_v41, %v567_v20  ;;  %649 = vst.msk [vmem:[%s1143_s29 + $0x18] sm:$0xff] %vm645_vm5, %v644_v40  ;;  %v599_v54 = vmul.f32 %v940_v18, %v598_v49  ;;  %vm629_vm5 = vcmask 8200   ;;  %s868_s29 = sld [smem:[#allocation6 + $0x1]] (!%p865_p8) }
 0x13e   : > { %945 = vrsqrt.f32 %v569_v26  ;;  %v575_v50 = vmul.f32 %v942_v22, %v574_v44  ;;  %vm613_vm3 = vcmp.eq.f32.partialorder %v569_v26, inf  ;;  %v616_v13 = vand.u32 2147483648, %v569_v26 }
 0x13f   : > { %v501_v21 = vrot.slane %v500_v42, 1  ;;  %v584_v46 = vmul.f32 %v944_v41, %v583_v45  ;;  %v600_v61 = vmul.f32 %v599_v54, %v1209_v62  ;;  %vm615_vm4 = vcmp.eq.f32.partialorder %v569_v26, 0.0 }
 0x140   : > { %v576_v55 = vmul.f32 %v575_v50, %v1213_v63 }
 0x141   : > { %v502_v48 = vadd.f32 %v501_v21, %v500_v42  ;;  %v585_v51 = vmul.f32 0.5, %v584_v46  ;;  %v602_v8 = vsel %vm601_vm1, %v1209_v62, %v600_v61 }
 0x142   : > { %v578_v0 = vsel %vm577_vm13, %v1213_v63, %v576_v55  ;;  %v605_v12 = vsel %vm603_vm2, %v604_v11, %v602_v8 }
 0x143   : > { %v503_v30 = vadd.f32 %v502_v48, %v493_v47  ;;  %v586_v52 = vsub.f32 1.5, %v585_v51  ;;  %v581_v6 = vsel %vm579_vm0, %v580_v3, %v578_v0 }
 0x144   : > { %v946_v53 = vpop.eup %945 }
 0x145   : > { %505 = vst.msk [vmem:[#allocation2] sm:$0x1] %vm504_vm12, %v503_v30  ;;  %v587_v56 = vmul.f32 %v944_v41, %v586_v52  ;;  %v607_v57 = vmul.f32 %v946_v53, %v569_v26 }
 0x147   : > { %v588_v58 = vmul.f32 %v587_v56, %v567_v20  ;;  %v608_v59 = vmul.f32 %v946_v53, %v607_v57 }
 0x149   : > { %v590_v1 = vsel %vm589_vm14, %v567_v20, %v588_v58  ;;  %v609_v2 = vmul.f32 0.5, %v608_v59 }
 0x14a   : > { %v593_v4 = vsel %vm591_vm15, %v592_v60, %v590_v1 }
 0x14b   : > { %v610_v5 = vsub.f32 1.5, %v609_v2  ;;  %v619_v9 = vadd.f32 %v593_v4, %v581_v6 }
 0x14c   : > { %v618_v25 = vld [vmem:[#allocation2] sm:$0x1] }
 0x14d   : > { %v611_v10 = vmul.f32 %v946_v53, %v610_v5  ;;  %v620_v14 = vadd.f32 %v619_v9, %v605_v12 }
 0x14f   : > { %v612_v7 = vmul.f32 %v611_v10, %v569_v26 }
 0x151   : > { %v614_v15 = vsel %vm613_vm3, %v569_v26, %v612_v7 }
 0x152   : > { %v617_v63 = vsel %vm615_vm4, %v616_v13, %v614_v15 }
 0x153   : > { %v621_v16 = vadd.f32 %v620_v14, %v617_v63 }
 0x155   : > { %v622_v17 = vrot.slane %v621_v16, 4 }
 0x157   : > { %v623_v18 = vadd.f32 %v622_v17, %v621_v16 }
 0x159   : > { %v624_v19 = vrot.slane %v623_v18, 2 }
 0x15b   : > { %v625_v20 = vadd.f32 %v624_v19, %v623_v18 }
 0x15d   : > { %v626_v22 = vrot.slane %v625_v20, 1 }
 0x15f   : > { %v627_v23 = vadd.f32 %v626_v22, %v625_v20  ;;  %653 = sbr.rel (%p865_p8) target bundleno = 508 (0x1fc), region = 68 }
 0x161   : > { %v628_v27 = vadd.f32 %v627_v23, %v618_v25 }
 0x163   : > { %630 = vst.msk [vmem:[#allocation2] sm:$0x1] %vm629_vm5, %v628_v27 }
 0x164   : > { %v664_v62 = vstv %s654_s24  ;;  %v666_v28 = vstv %s866_s25  ;;  %v695_v29 = vstv %s870_s26  ;;  %v663_v32 = vstv %s868_s29 }
 0x165   : > { %v696_v31 = vadd.f32 %v695_v29, %v664_v62  ;;  %v665_v33 = vadd.f32 %v664_v62, %v663_v32  ;;  %v660_v42 = vstv %s867_s30  ;;  %v694_v45 = vstv %s869_s9 }
 0x166   : > { %v662_v50 = vstv %s657_s10  ;;  %vm728_vm1 = vcmask 16400   ;;  %vm730_vm2 = vcmask 24600  }
 0x167   : > { %v697_v24 = vsub.f32 %v696_v31, %v666_v28  ;;  %v667_v35 = vsub.f32 %v665_v33, %v666_v28 }
 0x169   : > { %v698_v34 = vmax.f32 %v697_v24, 0.0  ;;  %v668_v37 = vmax.f32 %v667_v35, 0.0 }
 0x16a   : > { %v659_v26 = vld [vmem:[#allocation2] sm:$0x1] }
 0x16b   : > { %v699_v36 = vsub.f32 %v695_v29, %v698_v34  ;;  %v669_v39 = vsub.f32 %v663_v32, %v668_v37  ;;  %v661_v44 = vmul.f32 %v660_v42, %v659_v26 }
 0x16d   : > { %v700_v38 = vadd.f32 %v699_v36, %v664_v62  ;;  %v670_v41 = vadd.f32 %v669_v39, %v664_v62  ;;  %v672_v48 = vmul.f32 %v664_v62, %v661_v44  ;;  %v701_v49 = vmul.f32 %v699_v36, %v694_v45 }
 0x16e   : > { %v671_v56 = vmul.f32 %v669_v39, %v662_v50 }
 0x16f   : > { %vm703_vm6 = vcmp.gt.f32.partialorder %v700_v38, 0.0  ;;  %vm674_vm7 = vcmp.gt.f32.partialorder %v670_v41, 0.0  ;;  %v702_v60 = vadd.f32 %v701_v49, %v672_v48 }
 0x170   : > { %v704_v40 = vsel %vm703_vm6, %v700_v38, 1.0  ;;  %v675_v43 = vsel %vm674_vm7, %v670_v41, 1.0  ;;  %v673_v4 = vadd.f32 %v672_v48, %v671_v56 }
 0x171   : > { %947 = vrcp.f32 %v704_v40  ;;  %v716_v47 = vand.u32 2147483648, %v704_v40  ;;  %vm710_vm8 = vweird.f32 %v704_v40  ;;  %v714_v52 = vand.u32 2147483647, %v704_v40 }
 0x172   : > { %949 = vrcp.f32 %v675_v43  ;;  %v687_v57 = vand.u32 2147483648, %v675_v43  ;;  %vm681_vm11 = vweird.f32 %v675_v43  ;;  %v685_v59 = vand.u32 2147483647, %v675_v43 }
 0x173   : > { %v717_v55 = vor.u32 1.1754944e-38, %v716_v47  ;;  %vm715_vm14 = vcmp.eq.f32.partialorder %v714_v52, 8.507059e+37 }
 0x174   : > { %v688_v2 = vor.u32 1.1754944e-38, %v687_v57  ;;  %vm686_vm0 = vcmp.eq.f32.partialorder %v685_v59, 8.507059e+37 }
 0x177   : > { %v948_v21 = vpop.eup %947 }
 0x178   : > { %v706_v46 = vmul.f32 %v948_v21, %v704_v40  ;;  %v950_v51 = vpop.eup %949  ;;  %vm711_vm9 = vweird.f32 %v948_v21 }
 0x179   : > { %v677_v53 = vmul.f32 %v950_v51, %v675_v43  ;;  %vm712_vm10 = vmor %vm710_vm8, %vm711_vm9  ;;  %vm682_vm13 = vweird.f32 %v950_v51 }
 0x17a   : > { %v707_v30 = vsub.f32 1.0, %v706_v46  ;;  %vm683_vm15 = vmor %vm681_vm11, %vm682_vm13 }
 0x17b   : > { %v678_v58 = vsub.f32 1.0, %v677_v53 }
 0x17c   : > { %v708_v54 = vmul.f32 %v948_v21, %v707_v30 }
 0x17d   : > { %v679_v0 = vmul.f32 %v950_v51, %v678_v58 }
 0x17e   : > { %v709_v61 = vadd.f32 %v948_v21, %v708_v54 }
 0x17f   : > { %v680_v5 = vadd.f32 %v950_v51, %v679_v0 }
 0x180   : > { %v713_v1 = vsel %vm712_vm10, %v948_v21, %v709_v61 }
 0x181   : > { %v718_v3 = vsel %vm715_vm14, %v717_v55, %v713_v1  ;;  %v684_v8 = vsel %vm683_vm15, %v950_v51, %v680_v5 }
 0x182   : > { %v719_v6 = vmul.f32 %v718_v3, %v702_v60  ;;  %v689_v10 = vsel %vm686_vm0, %v688_v2, %v684_v8 }
 0x183   : > { %v690_v7 = vmul.f32 %v689_v10, %v673_v4 }
 0x184   : > { %v720_v9 = vsel %vm703_vm6, %v719_v6, 1.0 }
 0x185   : > { %v724_v11 = vperm.slane %v720_v9, 0  ;;  %v691_v12 = vsel %vm674_vm7, %v690_v7, 1.0 }
 0x186   : > { %721 = vst.msk [vmem:[#allocation9] sm:$0x1] %vm504_vm12, %v691_v12 }
 0x187   : > { %725 = vrot.lane.b32.xlu0 %v724_v11, %s1050_s11  ;;  %722 = vst.msk [vmem:[#allocation9] sm:$0x1] %vm629_vm5, %v670_v41 }
 0x1f9   : > { %v726_v13 = vpop.permute.xlu0 %725 }
 0x1fa   : > { %729 = vst.msk [vmem:[#allocation9] sm:$0x1] %vm728_vm1, %v726_v13 }
 0x1fb   : > { %731 = vst.msk [vmem:[#allocation9] sm:$0x1] %vm730_vm2, %v700_v38 }
 0x1fc PF: > { %p907_p9 = scmp.eq.s32.totalorder %s1103_s28, 3  ;;  %s1051_s12 = smov [#allocation9]  }
 0x1fd   : > { %s747_s13 = sshll.u32 %s1051_s12, 4  ;;  %s749_s16 = sshll.u32 %s1285_s8, 4  ;;  %s748_s13 = int_to_ptr.vmem [resolvable:$true] %s747_s13  ;;  %s750_s16 = int_to_ptr.hbm [resolvable:$true] %s749_s16 }
 0x1fe   : > { %888 = dma.vmem_to_hbm [thread:$0]  (%p907_p9), %s748_s13, 16, %s750_s16, [#allocation4]  }
 0x1ff   : > { %1037 = dma.done.wait (%p907_p9), [#allocation4], 16  }
 0x200   : > { %1039 = vsyncadd (%p907_p9), [#allocation4], 4294967280 }
 0x201 PF: > { %s22_s27 = sadd.s32 1, %s1042_s27  }
 0x202   : > { %p19_p10 = scmp.ge.s32.totalorder %s22_s27, 6  }
 0x204   :  { %21 = sbr.rel (!%p19_p10) target bundleno = 3 (0x3), region = 108 }
 0x209   :  { %771 = vsyncpa [#allocation4], 1 }
 0x20a   :  { %773 = vsyncpa [#allocation4 + $0x1], 1 }
 0x20b   :  { %774 = vsyncpa [#allocation5], 1 }
 0x20c   :  { %776 = vsyncpa [#allocation5 + $0x1], 1 }
 0x20d   :  { %777 = vsyncpa [#allocation7], 1 }

</bundles_post_ra>
